<compile_context>
chip_gen: v7x
topology: tpu7x:2x2x1
jax: 0.10.0
libtpu: 0.0.40
codegen_flags: <defaults>
</compile_context>

<pallas_src>
import jax
import jax.numpy as jnp
import numpy as np
from jax.experimental import pallas as pl
from jax.experimental.pallas import tpu as pltpu

# ----- configuration (small, consistent with the module: g=2, e=4) -----
N, C1, H, W = 2, 32, 16, 16
HW = H * W
C2 = C1                      # non-downsample => c1 == c2
G = 2                        # groups
E = 4                        # expansion denominator
MID = C2 // E                # mid_channels = 8
EPS = 1e-5                   # BatchNorm eps


# ----------------------------- fused Pallas kernel -----------------------------

def shuffle_unit_kernel(x_ref, w1_ref, b1_ref, w2m_ref, w3_ref, b3_ref, o_ref):
    # x_ref block: (1, C1, L) -> (C1, L); L = HW (v7x path) or N*HW (single-step)
    x = x_ref[0].astype(jnp.float32)
    L = x.shape[1]

    # --- stage 1: grouped 1x1 conv (dense block-diag, BN scale + channel shuffle
    #     folded into the weight rows) + bias + ReLU
    h = jnp.dot(w1_ref[...], x, preferred_element_type=jnp.float32)      # (MID, L)
    h = jnp.maximum(h + b1_ref[...], 0.0)

    # --- stage 2: depthwise 3x3 (stride 1, pad 1); each tap = XLU roll along the
    #     flattened lane axis * precomputed (mask x scaled-tap-weight) + add.
    acc = None
    k = 0
    for dy in (-1, 0, 1):
        for dx in (-1, 0, 1):
            d = dy * W + dx
            tap = pltpu.roll(h, (-d) % L, 1) if d != 0 else h             # XLU slot
            term = tap * w2m_ref[k]                                       # (MID, L)
            acc = term if acc is None else acc + term
            k += 1

    # --- stage 3: grouped 1x1 conv (BN scale folded into rows, stage-2 bias
    #     folded into b3) + residual add + ReLU
    y = jnp.dot(w3_ref[...], acc, preferred_element_type=jnp.float32)     # (C2, L)
    y = y + b3_ref[...] + x
    o_ref[...] = jnp.maximum(y, 0.0)[None].astype(o_ref.dtype)


def run_shuffle_unit(x3d, w1, b1, w2m, w3, b3):
    nb, cin, L = x3d.shape           # nb = number of grid steps, L = lanes per block
    return pl.pallas_call(
        shuffle_unit_kernel,
        out_shape=jax.ShapeDtypeStruct((nb, C2, L), x3d.dtype),
        grid_spec=pltpu.PrefetchScalarGridSpec(
            num_scalar_prefetch=0,
            grid=(nb,),
            in_specs=[
                pl.BlockSpec((1, cin, L), lambda n: (n, 0, 0)),     # x
                pl.BlockSpec((MID, cin), lambda n: (0, 0)),         # w1 (BN-scaled)
                pl.BlockSpec((MID, 1), lambda n: (0, 0)),           # b1
                pl.BlockSpec((9, MID, L), lambda n: (0, 0, 0)),     # masked dw taps
                pl.BlockSpec((C2, MID), lambda n: (0, 0)),          # w3 (BN-scaled)
                pl.BlockSpec((C2, 1), lambda n: (0, 0)),            # b3 (+ folded b2)
            ],
            out_specs=pl.BlockSpec((1, C2, L), lambda n: (n, 0, 0))),
        compiler_params=pltpu.CompilerParams(
            dimension_semantics=("parallel",)),
    )(x3d, w1, b1, w2m, w3, b3)


# ----------------------------- parameter glue -----------------------------

def bn_fold(bn):
    gamma, beta, mean, var = bn
    scale = gamma / jnp.sqrt(var + EPS)
    bias = beta - mean * scale
    return scale, bias


def dense_grouped_1x1(w_oihw, groups):
    # PyTorch grouped 1x1 conv weight (Cout, Cin//g, 1, 1) -> dense (Cout, Cin)
    Cout, Cin_g = w_oihw.shape[0], w_oihw.shape[1]
    out_g = Cout // groups
    w2 = w_oihw[:, :, 0, 0]
    dense = jnp.zeros((Cout, Cin_g * groups), w_oihw.dtype)
    for j in range(groups):
        dense = dense.at[j * out_g:(j + 1) * out_g,
                         j * Cin_g:(j + 1) * Cin_g].set(w2[j * out_g:(j + 1) * out_g])
    return dense


def build_dw_taps(w2_oihw, s2, lane_tiles):
    """(9, MID, lane_tiles*HW): BN-scaled depthwise tap weights pre-multiplied by
    the per-lane halo validity mask (so in-kernel each tap is roll+mul+add)."""
    w2s = w2_oihw[:, 0, :, :].reshape(MID, 9) * s2[:, None]        # (MID, 9)
    p = jnp.arange(HW)
    yy = p // W
    xx = p % W
    taps = []
    k = 0
    for dy in (-1, 0, 1):
        for dx in (-1, 0, 1):
            valid = ((yy + dy >= 0) & (yy + dy < H) &
                     (xx + dx >= 0) & (xx + dx < W)).astype(w2s.dtype)   # (HW,)
            taps.append(w2s[:, k][:, None] * valid[None, :])             # (MID, HW)
            k += 1
    w2m = jnp.stack(taps, axis=0)                                        # (9, MID, HW)
    if lane_tiles > 1:
        w2m = jnp.tile(w2m, (1, 1, lane_tiles))
    return w2m


def _use_megacore(nb):
    # v7x has two TensorCores per chip: keep grid=(N,) "parallel" there.
    # v5e / v6e are single-TC: fold the batch into the lane axis instead.
    if nb < 2:
        return False
    try:
        kind = jax.devices()[0].device_kind.lower()
    except Exception:
        return False
    return ("v7" in kind) or ("7x" in kind)


def shuffle_unit_forward(x_nchw, params):
    Nb = x_nchw.shape[0]

    # ---- stage 1: block-diag weight, channel shuffle + BN scale folded in ----
    s1, b1 = bn_fold(params['bn1'])
    w1d = dense_grouped_1x1(params['w1'], G)                       # (MID, C1)
    cpg = MID // G
    perm = jnp.arange(MID).reshape(G, cpg).T.reshape(-1)           # shuffle perm
    w1f = (s1[perm])[:, None] * w1d[perm, :]
    b1f = b1[perm]

    # ---- stage 2 / 3 folding: s2 into dw taps, s3 into w3, b2 pushed into b3 ----
    s2, b2 = bn_fold(params['bn2'])
    s3, b3 = bn_fold(params['bn3'])
    w3f = s3[:, None] * dense_grouped_1x1(params['w3'], G)         # (C2, MID)
    b3f = b3 + w3f @ b2                                            # (C2,)

    if _use_megacore(Nb):
        # v7x: one image per TensorCore, lane axis = HW (256), no transposes.
        x3d = x_nchw.reshape(Nb, C1, HW)
        w2m = build_dw_taps(params['w2'], s2, lane_tiles=1)
        out = run_shuffle_unit(x3d, w1f, b1f.reshape(MID, 1), w2m,
                               w3f, b3f.reshape(C2, 1))
        return out.reshape(Nb, C2, H, W)
    else:
        # v5e/v6e: single grid step, batch folded into lanes (lane axis = N*HW).
        xl = x_nchw.reshape(Nb, C1, HW).transpose(1, 0, 2).reshape(1, C1, Nb * HW)
        w2m = build_dw_taps(params['w2'], s2, lane_tiles=Nb)
        out = run_shuffle_unit(xl, w1f, b1f.reshape(MID, 1), w2m,
                               w3f, b3f.reshape(C2, 1))
        return out.reshape(C2, Nb, HW).transpose(1, 0, 2).reshape(Nb, C2, H, W)
    # TODO(synk): downsample=True branch (stride-2 dw conv + 3x3 avgpool + concat)
    # is not implemented; only the default downsample=False path is covered.


# ----------------------------- pure-JAX reference -----------------------------

def reference(x, params):
    def bn(y, p):
        g_, b_, m_, v_ = p
        inv = g_ / jnp.sqrt(v_ + EPS)
        return (y - m_[None, :, None, None]) * inv[None, :, None, None] \
            + b_[None, :, None, None]
    dn = ('NCHW', 'OIHW', 'NCHW')
    y = jax.lax.conv_general_dilated(x, params['w1'], (1, 1), 'VALID',
                                     dimension_numbers=dn, feature_group_count=G)
    y = jax.nn.relu(bn(y, params['bn1']))
    Nb = y.shape[0]
    y = y.reshape(Nb, G, MID // G, H, W).transpose(0, 2, 1, 3, 4).reshape(Nb, MID, H, W)
    y = jax.lax.conv_general_dilated(y, params['w2'], (1, 1), ((1, 1), (1, 1)),
                                     dimension_numbers=dn, feature_group_count=MID)
    y = bn(y, params['bn2'])
    y = jax.lax.conv_general_dilated(y, params['w3'], (1, 1), 'VALID',
                                     dimension_numbers=dn, feature_group_count=G)
    y = bn(y, params['bn3'])
    return jax.nn.relu(y + x)


# ----------------------------- main -----------------------------

if __name__ == "__main__":
    key = jax.random.PRNGKey(0)
    ks = jax.random.split(key, 16)

    def bn_params(k, c):
        k1, k2, k3, k4 = jax.random.split(k, 4)
        return (jax.random.normal(k1, (c,)) * 0.1 + 1.0,               # gamma
                jax.random.normal(k2, (c,)) * 0.1,                      # beta
                jax.random.normal(k3, (c,)) * 0.1,                      # running_mean
                jax.random.uniform(k4, (c,), minval=0.5, maxval=1.5))   # running_var

    params = {
        'w1': jax.random.normal(ks[0], (MID, C1 // G, 1, 1)) * 0.2,
        'bn1': bn_params(ks[1], MID),
        'w2': jax.random.normal(ks[2], (MID, 1, 3, 3)) * 0.2,
        'bn2': bn_params(ks[3], MID),
        'w3': jax.random.normal(ks[4], (C2, MID // G, 1, 1)) * 0.2,
        'bn3': bn_params(ks[5], C2),
    }
    x = jax.random.normal(ks[6], (N, C1, H, W), dtype=jnp.float32)

    out = jax.block_until_ready(shuffle_unit_forward(x, params))
    ref = jax.block_until_ready(reference(x, params))
    np.testing.assert_allclose(np.asarray(out), np.asarray(ref),
                               rtol=1e-4, atol=1e-4)
    print("KERNEL_OK")
</pallas_src>

<mosaic_0001>
module attributes {stable_mosaic.version = 11 : i64} {
  func.func @shuffle_unit_kernel(%arg0: i32, %arg1: memref<1x32x512xf32, #tpu.memory_space<vmem>>, %arg2: memref<8x32xf32, #tpu.memory_space<vmem>>, %arg3: memref<8x1xf32, #tpu.memory_space<vmem>>, %arg4: memref<9x8x512xf32, #tpu.memory_space<vmem>>, %arg5: memref<32x8xf32, #tpu.memory_space<vmem>>, %arg6: memref<32x1xf32, #tpu.memory_space<vmem>>, %arg7: memref<1x32x512xf32, #tpu.memory_space<vmem>>) attributes {dimension_semantics = [#tpu.dimension_semantics<parallel>], iteration_bounds = array<i64: 1>, scalar_prefetch = 0 : i64, scratch_operands = 0 : i64, tpu.core_type = #tpu.core_type<tc>, window_params = [{transform_indices = @transform_0, window_bounds = array<i64: 1, 32, 512>}, {pipeline_mode = #tpu.pipeline_mode<synchronous>, transform_indices = @transform_1, window_bounds = array<i64: 8, 32>}, {pipeline_mode = #tpu.pipeline_mode<synchronous>, transform_indices = @transform_2, window_bounds = array<i64: 8, 1>}, {pipeline_mode = #tpu.pipeline_mode<synchronous>, transform_indices = @transform_3, window_bounds = array<i64: 9, 8, 512>}, {pipeline_mode = #tpu.pipeline_mode<synchronous>, transform_indices = @transform_4, window_bounds = array<i64: 32, 8>}, {pipeline_mode = #tpu.pipeline_mode<synchronous>, transform_indices = @transform_5, window_bounds = array<i64: 32, 1>}, {transform_indices = @transform_6, window_bounds = array<i64: 1, 32, 512>}]} {
    %c0 = arith.constant 0 : index
    %c0_0 = arith.constant 0 : index
    %c0_1 = arith.constant 0 : index
    %0 = vector.load %arg1[%c0, %c0_0, %c0_1] : memref<1x32x512xf32, #tpu.memory_space<vmem>>, vector<1x32x512xf32>
    %1 = vector.shape_cast %0 : vector<1x32x512xf32> to vector<32x512xf32>
    %c0_2 = arith.constant 0 : index
    %c0_3 = arith.constant 0 : index
    %2 = vector.load %arg2[%c0_2, %c0_3] : memref<8x32xf32, #tpu.memory_space<vmem>>, vector<8x32xf32>
    %cst = arith.constant dense<0.000000e+00> : vector<8x512xf32>
    %3 = tpu.matmul %2, %1, %cst {dimension_numbers = #tpu.dot_dimension_numbers<[1], [0], [0], [1], [0, 0, 1, 1], [], []>} : vector<8x32xf32>, vector<32x512xf32>, vector<8x512xf32> -> vector<8x512xf32>
    %c0_4 = arith.constant 0 : index
    %c0_5 = arith.constant 0 : index
    %4 = vector.load %arg3[%c0_4, %c0_5] : memref<8x1xf32, #tpu.memory_space<vmem>>, vector<8x1xf32>
    %5 = vector.broadcast %4 : vector<8x1xf32> to vector<8x512xf32>
    %6 = arith.addf %3, %5 : vector<8x512xf32>
    %cst_6 = arith.constant 0.000000e+00 : f32
    %7 = vector.broadcast %cst_6 : f32 to vector<8x512xf32>
    %8 = arith.maximumf %6, %7 : vector<8x512xf32>
    %c17_i32 = arith.constant 17 : i32
    %9 = tpu.dynamic_rotate %8 by %c17_i32 dim 1 : vector<8x512xf32>, i32 -> vector<8x512xf32>
    %c0_7 = arith.constant 0 : index
    %c0_8 = arith.constant 0 : index
    %c0_9 = arith.constant 0 : index
    %10 = vector.load %arg4[%c0_7, %c0_8, %c0_9] : memref<9x8x512xf32, #tpu.memory_space<vmem>>, vector<1x8x512xf32>
    %11 = vector.shape_cast %10 : vector<1x8x512xf32> to vector<8x512xf32>
    %12 = arith.mulf %9, %11 : vector<8x512xf32>
    %c16_i32 = arith.constant 16 : i32
    %13 = tpu.dynamic_rotate %8 by %c16_i32 dim 1 : vector<8x512xf32>, i32 -> vector<8x512xf32>
    %c1 = arith.constant 1 : index
    %c0_10 = arith.constant 0 : index
    %c0_11 = arith.constant 0 : index
    %14 = vector.load %arg4[%c1, %c0_10, %c0_11] : memref<9x8x512xf32, #tpu.memory_space<vmem>>, vector<1x8x512xf32>
    %15 = vector.shape_cast %14 : vector<1x8x512xf32> to vector<8x512xf32>
    %16 = arith.mulf %13, %15 : vector<8x512xf32>
    %17 = arith.addf %12, %16 : vector<8x512xf32>
    %c15_i32 = arith.constant 15 : i32
    %18 = tpu.dynamic_rotate %8 by %c15_i32 dim 1 : vector<8x512xf32>, i32 -> vector<8x512xf32>
    %c2 = arith.constant 2 : index
    %c0_12 = arith.constant 0 : index
    %c0_13 = arith.constant 0 : index
    %19 = vector.load %arg4[%c2, %c0_12, %c0_13] : memref<9x8x512xf32, #tpu.memory_space<vmem>>, vector<1x8x512xf32>
    %20 = vector.shape_cast %19 : vector<1x8x512xf32> to vector<8x512xf32>
    %21 = arith.mulf %18, %20 : vector<8x512xf32>
    %22 = arith.addf %17, %21 : vector<8x512xf32>
    %c1_i32 = arith.constant 1 : i32
    %23 = tpu.dynamic_rotate %8 by %c1_i32 dim 1 : vector<8x512xf32>, i32 -> vector<8x512xf32>
    %c3 = arith.constant 3 : index
    %c0_14 = arith.constant 0 : index
    %c0_15 = arith.constant 0 : index
    %24 = vector.load %arg4[%c3, %c0_14, %c0_15] : memref<9x8x512xf32, #tpu.memory_space<vmem>>, vector<1x8x512xf32>
    %25 = vector.shape_cast %24 : vector<1x8x512xf32> to vector<8x512xf32>
    %26 = arith.mulf %23, %25 : vector<8x512xf32>
    %27 = arith.addf %22, %26 : vector<8x512xf32>
    %c4 = arith.constant 4 : index
    %c0_16 = arith.constant 0 : index
    %c0_17 = arith.constant 0 : index
    %28 = vector.load %arg4[%c4, %c0_16, %c0_17] : memref<9x8x512xf32, #tpu.memory_space<vmem>>, vector<1x8x512xf32>
    %29 = vector.shape_cast %28 : vector<1x8x512xf32> to vector<8x512xf32>
    %30 = arith.mulf %8, %29 : vector<8x512xf32>
    %31 = arith.addf %27, %30 : vector<8x512xf32>
    %c511_i32 = arith.constant 511 : i32
    %32 = tpu.dynamic_rotate %8 by %c511_i32 dim 1 : vector<8x512xf32>, i32 -> vector<8x512xf32>
    %c5 = arith.constant 5 : index
    %c0_18 = arith.constant 0 : index
    %c0_19 = arith.constant 0 : index
    %33 = vector.load %arg4[%c5, %c0_18, %c0_19] : memref<9x8x512xf32, #tpu.memory_space<vmem>>, vector<1x8x512xf32>
    %34 = vector.shape_cast %33 : vector<1x8x512xf32> to vector<8x512xf32>
    %35 = arith.mulf %32, %34 : vector<8x512xf32>
    %36 = arith.addf %31, %35 : vector<8x512xf32>
    %c497_i32 = arith.constant 497 : i32
    %37 = tpu.dynamic_rotate %8 by %c497_i32 dim 1 : vector<8x512xf32>, i32 -> vector<8x512xf32>
    %c6 = arith.constant 6 : index
    %c0_20 = arith.constant 0 : index
    %c0_21 = arith.constant 0 : index
    %38 = vector.load %arg4[%c6, %c0_20, %c0_21] : memref<9x8x512xf32, #tpu.memory_space<vmem>>, vector<1x8x512xf32>
    %39 = vector.shape_cast %38 : vector<1x8x512xf32> to vector<8x512xf32>
    %40 = arith.mulf %37, %39 : vector<8x512xf32>
    %41 = arith.addf %36, %40 : vector<8x512xf32>
    %c496_i32 = arith.constant 496 : i32
    %42 = tpu.dynamic_rotate %8 by %c496_i32 dim 1 : vector<8x512xf32>, i32 -> vector<8x512xf32>
    %c7 = arith.constant 7 : index
    %c0_22 = arith.constant 0 : index
    %c0_23 = arith.constant 0 : index
    %43 = vector.load %arg4[%c7, %c0_22, %c0_23] : memref<9x8x512xf32, #tpu.memory_space<vmem>>, vector<1x8x512xf32>
    %44 = vector.shape_cast %43 : vector<1x8x512xf32> to vector<8x512xf32>
    %45 = arith.mulf %42, %44 : vector<8x512xf32>
    %46 = arith.addf %41, %45 : vector<8x512xf32>
    %c495_i32 = arith.constant 495 : i32
    %47 = tpu.dynamic_rotate %8 by %c495_i32 dim 1 : vector<8x512xf32>, i32 -> vector<8x512xf32>
    %c8 = arith.constant 8 : index
    %c0_24 = arith.constant 0 : index
    %c0_25 = arith.constant 0 : index
    %48 = vector.load %arg4[%c8, %c0_24, %c0_25] : memref<9x8x512xf32, #tpu.memory_space<vmem>>, vector<1x8x512xf32>
    %49 = vector.shape_cast %48 : vector<1x8x512xf32> to vector<8x512xf32>
    %50 = arith.mulf %47, %49 : vector<8x512xf32>
    %51 = arith.addf %46, %50 : vector<8x512xf32>
    %c0_26 = arith.constant 0 : index
    %c0_27 = arith.constant 0 : index
    %52 = vector.load %arg5[%c0_26, %c0_27] : memref<32x8xf32, #tpu.memory_space<vmem>>, vector<32x8xf32>
    %cst_28 = arith.constant dense<0.000000e+00> : vector<32x512xf32>
    %53 = tpu.matmul %52, %51, %cst_28 {dimension_numbers = #tpu.dot_dimension_numbers<[1], [0], [0], [1], [0, 0, 1, 1], [], []>} : vector<32x8xf32>, vector<8x512xf32>, vector<32x512xf32> -> vector<32x512xf32>
    %c0_29 = arith.constant 0 : index
    %c0_30 = arith.constant 0 : index
    %54 = vector.load %arg6[%c0_29, %c0_30] : memref<32x1xf32, #tpu.memory_space<vmem>>, vector<32x1xf32>
    %55 = vector.broadcast %54 : vector<32x1xf32> to vector<32x512xf32>
    %56 = arith.addf %53, %55 : vector<32x512xf32>
    %57 = arith.addf %56, %1 : vector<32x512xf32>
    %cst_31 = arith.constant 0.000000e+00 : f32
    %58 = vector.broadcast %cst_31 : f32 to vector<32x512xf32>
    %59 = arith.maximumf %57, %58 : vector<32x512xf32>
    %60 = vector.shape_cast %59 : vector<32x512xf32> to vector<1x32x512xf32>
    %c0_32 = arith.constant 0 : index
    %c0_33 = arith.constant 0 : index
    %c0_34 = arith.constant 0 : index
    %61 = vector.load %arg7[%c0_32, %c0_33, %c0_34] : memref<1x32x512xf32, #tpu.memory_space<vmem>>, vector<1x32x512xf32>
    tpu.vector_store %arg7[%c0_32, %c0_33, %c0_34], %60 {strides = array<i32>} : memref<1x32x512xf32, #tpu.memory_space<vmem>>, vector<1x32x512xf32>,
    return
  }
  func.func @transform_0(%arg0: i32) -> (i32, i32, i32) {
    %c0_i32 = arith.constant 0 : i32
    %c0_i32_0 = arith.constant 0 : i32
    %c0_i32_1 = arith.constant 0 : i32
    return %arg0, %c0_i32, %c0_i32_0 : i32, i32, i32
  }
  func.func @transform_1(%arg0: i32) -> (i32, i32) {
    %c0_i32 = arith.constant 0 : i32
    %c0_i32_0 = arith.constant 0 : i32
    %c0_i32_1 = arith.constant 0 : i32
    return %c0_i32, %c0_i32_0 : i32, i32
  }
  func.func @transform_2(%arg0: i32) -> (i32, i32) {
    %c0_i32 = arith.constant 0 : i32
    %c0_i32_0 = arith.constant 0 : i32
    %c0_i32_1 = arith.constant 0 : i32
    return %c0_i32, %c0_i32_0 : i32, i32
  }
  func.func @transform_3(%arg0: i32) -> (i32, i32, i32) {
    %c0_i32 = arith.constant 0 : i32
    %c0_i32_0 = arith.constant 0 : i32
    %c0_i32_1 = arith.constant 0 : i32
    %c0_i32_2 = arith.constant 0 : i32
    return %c0_i32, %c0_i32_0, %c0_i32_1 : i32, i32, i32
  }
  func.func @transform_4(%arg0: i32) -> (i32, i32) {
    %c0_i32 = arith.constant 0 : i32
    %c0_i32_0 = arith.constant 0 : i32
    %c0_i32_1 = arith.constant 0 : i32
    return %c0_i32, %c0_i32_0 : i32, i32
  }
  func.func @transform_5(%arg0: i32) -> (i32, i32) {
    %c0_i32 = arith.constant 0 : i32
    %c0_i32_0 = arith.constant 0 : i32
    %c0_i32_1 = arith.constant 0 : i32
    return %c0_i32, %c0_i32_0 : i32, i32
  }
  func.func @transform_6(%arg0: i32) -> (i32, i32, i32) {
    %c0_i32 = arith.constant 0 : i32
    %c0_i32_0 = arith.constant 0 : i32
    %c0_i32_1 = arith.constant 0 : i32
    return %arg0, %c0_i32, %c0_i32_0 : i32, i32, i32
  }
}

</mosaic_0001>

<bundles_post_ra>
// kernel: tpu_custom_call.1
= control target key start
LH: loop header
LB: loop body
LE: loop exit
PB: predicated region body
PF: predicated region fallthrough
CT: control target
= control target key end

     0   :  { %11 = vsyncpa [#allocation3], 0  ;;  %s1244_s0 = inlined_call_operand.hbm [shape: f32[1,32,512], index: 0, kind: input, shape index: {}]   ;;  %s1245_s1 = inlined_call_operand.vmem [shape: f32[8,32], index: 1, kind: input, shape index: {}]   ;;  %s1246_s2 = inlined_call_operand.vmem [shape: f32[8,1], index: 2, kind: input, shape index: {}]   ;;  %s1247_s3 = inlined_call_operand.hbm [shape: f32[9,8,512], index: 3, kind: input, shape index: {}]   ;;  %s1248_s4 = inlined_call_operand.vmem [shape: f32[32,8], index: 4, kind: input, shape index: {}]   ;;  %s1249_s5 = inlined_call_operand.vmem [shape: f32[32,1], index: 5, kind: input, shape index: {}]   ;;  %s1250_s6 = inlined_call_operand.hbm [shape: f32[1,32,512], index: 6, kind: output, shape index: {}]  }
   0x1   :  { %12 = vsyncpa [#allocation6], 0 }
   0x2   :  { %13 = vsyncpa [#allocation4], 0  ;;  %s843_s21 = smov [#allocation2]   ;;  %s771_s25 = scalar_lea.hbm %s1244_s0, 2048 }
   0x3   :  { %s19_s22 = sshll.u32 %s843_s21, 4  ;;  %p772_p0 = scmp.ne.s32.totalorder %s1244_s0, %s771_s25  ;;  %s20_s22 = int_to_ptr.vmem [resolvable:$true] %s19_s22 }
   0x4   :  { %p775_p1 = scmp.lt.u32.totalorder %s771_s25, %s1244_s0 }
   0x6   :  { %p777_p2 = pnand %p775_p1, %p772_p0 }
   0x8   :  { %780 = shalt.err (!%p777_p2)
}
   0x9   :  { %s781_s30 = scalar_lea.vmem %s20_s22, 2048  ;;  %p786_p4 = scmp.lt.s32.totalorder %s20_s22, %s20_s22 }
   0xa   :  { %p782_p3 = scmp.ne.s32.totalorder %s20_s22, %s781_s30  ;;  %p787_p5 = scmp.lt.s32.totalorder %s781_s30, %s781_s30 }
   0xc   :  { %p788_p6 = por %p787_p5, %p786_p4 }
   0xe   :  { %p789_p7 = pnand %p788_p6, %p782_p3 }
  0x10   :  { %792 = shalt.err (!%p789_p7)
}
  0x11   :  { %s844_s7 = smov 512   ;;  %s845_s8 = smov 32  }
  0x12   :  { %25 = dma.hbm_to_vmem [thread:$0]  %s1244_s0, 2048, %s20_s22, [#allocation3], %s844_s7, %s844_s7, %s845_s8  }
  0x13   :  { %s846_s11 = smov [#allocation5]   ;;  %s793_s15 = scalar_lea.hbm %s1247_s3, 4608 }
  0x14   :  { %s35_s12 = sshll.u32 %s846_s11, 4  ;;  %p794_p8 = scmp.ne.s32.totalorder %s1247_s3, %s793_s15  ;;  %s36_s12 = int_to_ptr.vmem [resolvable:$true] %s35_s12 }
  0x15   :  { %p797_p9 = scmp.lt.u32.totalorder %s793_s15, %s1247_s3 }
  0x17   :  { %p799_p10 = pnand %p797_p9, %p794_p8 }
  0x19   :  { %802 = shalt.err (!%p799_p10)
}
  0x1a   :  { %s803_s20 = scalar_lea.vmem %s36_s12, 4608  ;;  %p808_p12 = scmp.lt.s32.totalorder %s36_s12, %s36_s12 }
  0x1b   :  { %p804_p11 = scmp.ne.s32.totalorder %s36_s12, %s803_s20  ;;  %p809_p13 = scmp.lt.s32.totalorder %s803_s20, %s803_s20 }
  0x1d   :  { %p810_p0 = por %p809_p13, %p808_p12 }
  0x1f   :  { %p811_p1 = pnand %p810_p0, %p804_p11 }
  0x21   :  { %814 = shalt.err (!%p811_p1)
}
  0x22   :  { %41 = dma.hbm_to_vmem [thread:$0]  %s1247_s3, 4608, %s36_s12, [#allocation6], %s844_s7, %s844_s7, %s845_s8  }
  0x23   :  { %837 = dma.done.wait [#allocation3], 2048  }
  0x24   :  { %838 = vsyncadd [#allocation3], 4294965248 }
  0x25   :  { %839 = dma.done.wait [#allocation6], 4608  }
  0x26   :  { %840 = vsyncadd [#allocation6], 4294962688  ;;  %v1251_v0 = vmov 0.0   ;;  %v848_v1 = vmov 0   ;;  %v925_v2 = vld [vmem:[#allocation2 + $0x8] sm:$0xff]  ;;  %v929_v4 = vld [vmem:[#allocation2 + $0x18] sm:$0xff]  ;;  %v233_v59 = vlaneseq }
  0x27   :  { %143 = vmatprep.mubr.f32.mxu0 %v1251_v0  ;;  %214 = vmatprep.mubr.f32.mxu1 %v1251_v0  ;;  %v927_v3 = vld [vmem:[#allocation2 + $0x28] sm:$0xff]  ;;  %v933_v6 = vld [vmem:[#allocation2 + $0x38] sm:$0xff]  ;;  %v935_v7 = vld [vmem:[#allocation2] sm:$0xff]  ;;  %vm75_vm0 = vcmask 261120   ;;  %s851_s25 = smov 15   ;;  %s852_s26 = smov 1  }
  0x28   :  { %769 = vset.pattern.permute.xlu0 %v848_v1  ;;  %770 = vset.pattern.permute.xlu1 %v848_v1  ;;  %v738_v5 = vpack.c.bf16 %v927_v3, %v925_v2  ;;  %v937_v8 = vld [vmem:[#allocation2 + $0x20] sm:$0xff]  ;;  %v746_v9 = vpack.c.bf16 %v933_v6, %v929_v4  ;;  %v943_v11 = vld [vmem:[#allocation2 + $0x10] sm:$0xff]  ;;  %v947_v13 = vld [vmem:[#allocation2 + $0x48] sm:$0xff]  ;;  %s853_s27 = smov 127   ;;  %s854_s28 = smov 113   ;;  %v1055_v62 = vand.u32 127, %v233_v59 }
  0x29   :  { %v740_v10 = vpack.c.bf16 %v937_v8, %v935_v7  ;;  %v945_v12 = vld [vmem:[#allocation2 + $0x30] sm:$0xff]  ;;  %v951_v15 = vld [vmem:[#allocation2 + $0x68] sm:$0xff]  ;;  %v953_v16 = vld [vmem:[#allocation2 + $0x58] sm:$0xff]  ;;  %s855_s29 = smov 112   ;;  %s856_s30 = smov 111   ;;  %vm471_vm9 = vcmask 64512  }
  0x2a   :  { %739 = vmatprep.subr.bf16.mxu0 %v738_v5  ;;  %v748_v14 = vpack.c.bf16 %v945_v12, %v943_v11  ;;  %1255 = vst [vmem:[#allocation11_spill] sm:$0xff] %v951_v15  ;;  %v955_v17 = vld [vmem:[#allocation2 + $0x78] sm:$0xff]  ;;  %747 = vmatprep.subr.bf16.mxu1 %v746_v9  ;;  %v742_v18 = vpack.c.bf16 %v951_v15, %v947_v13  ;;  %v961_v20 = vld [vmem:[#allocation2 + $0x40] sm:$0xff]  ;;  %v965_v22 = vld [vmem:[#allocation2 + $0x50] sm:$0xff]  ;;  %vm235_vm1 = vcmp.lt.s32.totalorder %v1055_v62, 17  ;;  %vm256_vm2 = vcmp.lt.s32.totalorder %v1055_v62, 16 }
  0x2b   :  { %1256 = vst [vmem:[#allocation12_spill] sm:$0xff] %v955_v17  ;;  %741 = vmatpush1.bf16.msra.mxu0 %v740_v10  ;;  %v750_v19 = vpack.c.bf16 %v955_v17, %v953_v16  ;;  %v963_v21 = vld [vmem:[#allocation2 + $0x60] sm:$0xff]  ;;  %v969_v24 = vld [vmem:[#allocation2 + $0x70] sm:$0xff]  ;;  %v448_v41 = vld [vmem:[%s1249_s5 + $0x8] sm:$0xff]  ;;  %vm282_vm3 = vcmp.lt.s32.totalorder %v1055_v62, 15  ;;  %vm308_vm4 = vcmp.lt.s32.totalorder %v1055_v62, 1 }
  0x2c   :  { %749 = vmatpush1.bf16.msra.mxu1 %v748_v14  ;;  %v744_v23 = vpack.c.bf16 %v963_v21, %v961_v20  ;;  %v69_v25 = vld [vmem:[%s1246_s2] sm:$0xff]  ;;  %743 = vmatprep.subr.bf16.mxu0 %v742_v18  ;;  %v752_v26 = vpack.c.bf16 %v969_v24, %v965_v22  ;;  %s850_s2 = smov 16   ;;  %v450_v42 = vld [vmem:[%s1249_s5 + $0x18] sm:$0xff]  ;;  %v449_v44 = vld [vmem:[%s1249_s5 + $0x10] sm:$0xff]  ;;  %vm347_vm5 = vcmp.lt.s32.totalorder %v1055_v62, 127  ;;  %vm373_vm6 = vcmp.lt.s32.totalorder %v1055_v62, 113 }
  0x2d   :  { %751 = vmatprep.subr.bf16.mxu1 %v750_v19  ;;  %72 = vperm.xlu0 %769, %v69_v25   ;;  %v68_v27 = vld [vmem:[%s1245_s1] sm:$0xff]  ;;  %s849_s1 = smov 17   ;;  %v265_v25 = vld [vmem:[#allocation5 + $0x38] sm:$0xff]  ;;  %v289_v17 = vld [vmem:[#allocation5 + $0x48] sm:$0xff]  ;;  %vm399_vm7 = vcmp.lt.s32.totalorder %v1055_v62, 112  ;;  %vm425_vm8 = vcmp.lt.s32.totalorder %v1055_v62, 111 }
  0x2e   :  { %v447_v43 = vld [vmem:[%s1249_s5] sm:$0xff]  ;;  %v1257_v62 = vmov 0.0  }
  0x2f   :  { %745 = vmatpush1.bf16.msra.mxu0 %v744_v23  ;;  %v262_v5 = vld [vmem:[#allocation5 + $0x20] sm:$0xff] }
  0x30   :  { %753 = vmatpush1.bf16.msra.mxu1 %v752_v26  ;;  %v327_v10 = vld [vmem:[#allocation5 + $0x80] sm:$0xff] }
  0x31   :  { %v240_v18 = vld [vmem:[#allocation5] sm:$0xff] }
  0x32   :  { %728 = vmatmul.mubr.msk.f32.vlgmr.msra.gmra.mrb[0].mxu0 %vm75_vm0, %v68_v27 }
  0x33   :  { %729 = vmatmul.mubr.msk.f32.vlgmr.msra.gmra.mrb[0].mxu1 %vm75_vm0, %v68_v27  ;;  %548 = vmatprep.mubr.f32.mxu0 %v1251_v0  ;;  %v288_v27 = vld [vmem:[#allocation5 + $0x40] sm:$0xff] }
  0x34   :  { %637 = vmatprep.mubr.f32.mxu1 %v1251_v0 }
  0xac   :  { %v73_v28 = vpop.permute.xlu0 %72 }
 0x105   :  { %v145_v29 = vpop.f32.mrb[0].mxu0 }
 0x106   :  { %v146_v30 = vadd.f32 %v145_v29, %v73_v28  ;;  %v216_v31 = vpop.f32.mrb[0].mxu1  ;;  %v147_v32 = vpop.f32.mrb[1].mxu0 }
 0x107   :  { %v217_v33 = vadd.f32 %v216_v31, %v73_v28  ;;  %v218_v34 = vpop.f32.mrb[1].mxu1  ;;  %v148_v38 = vadd.f32 %v147_v32, %v73_v28  ;;  %v330_v31 = vld [vmem:[#allocation5 + $0x98] sm:$0xff]  ;;  %v329_v32 = vld [vmem:[#allocation5 + $0x90] sm:$0xff] }
 0x108   :  { %v981_v35 = vmax.f32 %v146_v30, 0.0  ;;  %v219_v36 = vadd.f32 %v218_v34, %v73_v28  ;;  %v243_v34 = vld [vmem:[#allocation5 + $0x18] sm:$0xff] }
 0x109   :  { %v983_v37 = vmax.f32 %v217_v33, 0.0  ;;  %v994_v40 = vmax.f32 %v148_v38, 0.0  ;;  %v328_v33 = vld [vmem:[#allocation5 + $0x88] sm:$0xff] }
 0x10a   :  { %225 = vrot.lane.b32.xlu0 %v981_v35, %s849_s1  ;;  %v989_v39 = vmax.f32 %v219_v36, 0.0  ;;  %v1080_v30 = vmul.f32 %v327_v10, %v981_v35 }
 0x10b   :  { %229 = vrot.lane.b32.xlu1 %v983_v37, %s849_s1  ;;  %v1107_v0 = vmul.f32 %v328_v33, %v994_v40 }
 0x10e   :  { %231 = vrot.lane.b32.xlu0 %v989_v39, %s849_s1 }
 0x10f   :  { %248 = vrot.lane.b32.xlu1 %v981_v35, %s850_s2 }
 0x112   :  { %250 = vrot.lane.b32.xlu0 %v994_v40, %s850_s2 }
 0x113   :  { %252 = vrot.lane.b32.xlu1 %v983_v37, %s850_s2 }
 0x116   :  { %254 = vrot.lane.b32.xlu0 %v989_v39, %s850_s2 }
 0x117   :  { %274 = vrot.lane.b32.xlu1 %v981_v35, %s851_s25 }
 0x11a   :  { %276 = vrot.lane.b32.xlu0 %v994_v40, %s851_s25 }
 0x11b   :  { %278 = vrot.lane.b32.xlu1 %v983_v37, %s851_s25 }
 0x11e   :  { %280 = vrot.lane.b32.xlu0 %v989_v39, %s851_s25 }
 0x11f   :  { %300 = vrot.lane.b32.xlu1 %v981_v35, %s852_s26 }
 0x122   :  { %302 = vrot.lane.b32.xlu0 %v994_v40, %s852_s26 }
 0x123   :  { %304 = vrot.lane.b32.xlu1 %v983_v37, %s852_s26 }
 0x126   :  { %306 = vrot.lane.b32.xlu0 %v989_v39, %s852_s26 }
 0x127   :  { %339 = vrot.lane.b32.xlu1 %v981_v35, %s853_s27 }
 0x12a   :  { %341 = vrot.lane.b32.xlu0 %v994_v40, %s853_s27 }
 0x12b   :  { %343 = vrot.lane.b32.xlu1 %v983_v37, %s853_s27 }
 0x12e   :  { %345 = vrot.lane.b32.xlu0 %v989_v39, %s853_s27 }
 0x12f   :  { %365 = vrot.lane.b32.xlu1 %v981_v35, %s854_s28 }
 0x132   :  { %367 = vrot.lane.b32.xlu0 %v994_v40, %s854_s28 }
 0x133   :  { %369 = vrot.lane.b32.xlu1 %v983_v37, %s854_s28 }
 0x136   :  { %371 = vrot.lane.b32.xlu0 %v989_v39, %s854_s28 }
 0x137   :  { %227 = vrot.lane.b32.xlu1 %v994_v40, %s849_s1 }
 0x13a   :  { %393 = vrot.lane.b32.xlu0 %v994_v40, %s855_s29 }
 0x13b   :  { %391 = vrot.lane.b32.xlu1 %v981_v35, %s855_s29 }
 0x13e   :  { %397 = vrot.lane.b32.xlu0 %v989_v39, %s855_s29 }
 0x13f   :  { %395 = vrot.lane.b32.xlu1 %v983_v37, %s855_s29 }
 0x142   :  { %419 = vrot.lane.b32.xlu0 %v994_v40, %s856_s30 }
 0x143   :  { %417 = vrot.lane.b32.xlu1 %v981_v35, %s856_s30  ;;  %v263_v35 = vld [vmem:[#allocation5 + $0x28] sm:$0xff] }
 0x146   :  { %423 = vrot.lane.b32.xlu0 %v989_v39, %s856_s30 }
 0x147   :  { %421 = vrot.lane.b32.xlu1 %v983_v37, %s856_s30 }
 0x14a   :  { %458 = vperm.xlu0 %769, %v448_v41  }
 0x14b   :  { %453 = vperm.xlu1 %770, %v447_v43  }
 0x14e   :  { %468 = vperm.xlu0 %769, %v450_v42   ;;  %v314_v42 = vld [vmem:[#allocation5 + $0x60] sm:$0xff] }
 0x14f   :  { %463 = vperm.xlu1 %770, %v449_v44  }
 0x17c   :  { %v1037_v45 = vpop.permute.xlu0 %225 }
 0x17d   :  { %v1039_v46 = vpop.permute.xlu1 %229 }
 0x180   :  { %v232_v47 = vpop.permute.xlu0 %231 }
 0x181   :  { %v249_v48 = vpop.permute.xlu1 %248  ;;  %v239_v19 = vsel %vm235_vm1, %v232_v47, %v1037_v45  ;;  %v236_v36 = vsel %vm235_vm1, %v1039_v46, %v232_v47 }
 0x182   :  { %v244_v38 = vmul.f32 %v240_v18, %v239_v19  ;;  %v1101_v18 = vmul.f32 %v330_v31, %v989_v39  ;;  %v1104_v19 = vmul.f32 %v329_v32, %v983_v37  ;;  %v241_v39 = vld [vmem:[#allocation5 + $0x8] sm:$0xff]  ;;  %v242_v31 = vld [vmem:[#allocation5 + $0x10] sm:$0xff] }
 0x184   :  { %v251_v49 = vpop.permute.xlu0 %250 }
 0x185   :  { %v253_v50 = vpop.permute.xlu1 %252  ;;  %v259_v41 = vsel %vm256_vm2, %v249_v48, %v251_v49 }
 0x186   :  { %v258_v59 = vsel %vm256_vm2, %v251_v49, %v253_v50  ;;  %v247_v49 = vmul.f32 %v243_v34, %v236_v36  ;;  %v290_v34 = vld [vmem:[#allocation5 + $0x50] sm:$0xff] }
 0x188   :  { %v255_v51 = vpop.permute.xlu0 %254 }
 0x189   :  { %v1041_v52 = vpop.permute.xlu1 %274  ;;  %v260_v9 = vsel %vm256_vm2, %v255_v51, %v249_v48  ;;  %v257_v26 = vsel %vm256_vm2, %v253_v50, %v255_v51  ;;  %v264_v51 = vld [vmem:[#allocation5 + $0x30] sm:$0xff] }
 0x18a   :  { %v266_v29 = vmul.f32 %v262_v5, %v260_v9  ;;  %v269_v5 = vmul.f32 %v265_v25, %v257_v26  ;;  %v291_v9 = vld [vmem:[#allocation5 + $0x58] sm:$0xff] }
 0x18b   :  { %v317_v25 = vld [vmem:[#allocation5 + $0x78] sm:$0xff] }
 0x18c   :  { %v1043_v53 = vpop.permute.xlu0 %276  ;;  %v270_v50 = vadd.f32 %v266_v29, %v244_v38  ;;  %v273_v32 = vadd.f32 %v269_v5, %v247_v49 }
 0x18d   :  { %v1045_v54 = vpop.permute.xlu1 %278 }
 0x18e   :  { %v284_v40 = vsel %vm282_vm3, %v1043_v53, %v1045_v54 }
 0x190   :  { %v281_v55 = vpop.permute.xlu0 %280 }
 0x191   :  { %v1047_v56 = vpop.permute.xlu1 %300  ;;  %v286_v28 = vsel %vm282_vm3, %v281_v55, %v1041_v52  ;;  %v283_v47 = vsel %vm282_vm3, %v1045_v54, %v281_v55 }
 0x192   :  { %v292_v10 = vmul.f32 %v288_v27, %v286_v28  ;;  %v267_v27 = vmul.f32 %v263_v35, %v259_v41  ;;  %v268_v28 = vmul.f32 %v264_v51, %v258_v59  ;;  %v295_v15 = vmul.f32 %v291_v9, %v283_v47  ;;  %v356_v9 = vld [vmem:[#allocation5 + $0xb8] sm:$0xff] }
 0x194   :  { %v1049_v57 = vpop.permute.xlu0 %302  ;;  %v296_v29 = vadd.f32 %v292_v10, %v270_v50  ;;  %v299_v59 = vadd.f32 %v295_v15, %v273_v32 }
 0x195   :  { %v1051_v58 = vpop.permute.xlu1 %304  ;;  %v311_v36 = vsel %vm308_vm4, %v1047_v56, %v1049_v57 }
 0x198   :  { %v307_v60 = vpop.permute.xlu0 %306 }
 0x199   :  { %v1053_v61 = vpop.permute.xlu1 %339  ;;  %v312_v43 = vsel %vm308_vm4, %v307_v60, %v1047_v56  ;;  %v309_v55 = vsel %vm308_vm4, %v1051_v58, %v307_v60  ;;  %v285_v60 = vsel %vm282_vm3, %v1041_v52, %v1043_v53  ;;  %v310_v52 = vsel %vm308_vm4, %v1049_v57, %v1051_v58 }
 0x19a   :  { %v318_v26 = vmul.f32 %v314_v42, %v312_v43  ;;  %v321_v38 = vmul.f32 %v317_v25, %v309_v55  ;;  %v315_v42 = vld [vmem:[#allocation5 + $0x68] sm:$0xff]  ;;  %v316_v43 = vld [vmem:[#allocation5 + $0x70] sm:$0xff]  ;;  %v293_v56 = vmul.f32 %v289_v17, %v285_v60  ;;  %v353_v17 = vld [vmem:[#allocation5 + $0xa0] sm:$0xff] }
 0x19b   :  { %v319_v58 = vmul.f32 %v315_v42, %v311_v36  ;;  %v320_v49 = vmul.f32 %v316_v43, %v310_v52  ;;  %v354_v25 = vld [vmem:[#allocation5 + $0xa8] sm:$0xff]  ;;  %v379_v60 = vld [vmem:[#allocation5 + $0xc0] sm:$0xff]  ;;  %v408_v42 = vld [vmem:[#allocation5 + $0xf8] sm:$0xff] }
 0x19c   :  { %v1057_v63 = vpop.permute.xlu0 %341  ;;  %v322_v53 = vadd.f32 %v318_v26, %v296_v29  ;;  %v325_v50 = vadd.f32 %v321_v38, %v299_v59  ;;  %v380_v29 = vld [vmem:[#allocation5 + $0xc8] sm:$0xff] }
 0x19d   :  { %v1059_v1 = vpop.permute.xlu1 %343  ;;  %v350_v15 = vsel %vm347_vm5, %v1053_v61, %v1057_v63 }
 0x19e   :  { %v335_v55 = vadd.f32 %v1080_v30, %v322_v53  ;;  %v349_v26 = vsel %vm347_vm5, %v1057_v63, %v1059_v1  ;;  %v382_v30 = vld [vmem:[#allocation5 + $0xd8] sm:$0xff] }
 0x1a0   :  { %v1065_v14 = vpop.permute.xlu0 %345 }
 0x1a1   :  { %v1071_v23 = vpop.permute.xlu1 %365 }
 0x1a4   :  { %v1090_v44 = vpop.permute.xlu0 %367 }
 0x1a5   :  { %v1097_v48 = vpop.permute.xlu1 %369 }
 0x1a8   :  { %v372_v37 = vpop.permute.xlu0 %371 }
 0x1a9   :  { %v228_v33 = vpop.permute.xlu1 %227  ;;  %v374_v36 = vsel %vm373_vm6, %v1097_v48, %v372_v37 }
 0x1aa   :  { %v237_v41 = vsel %vm235_vm1, %v228_v33, %v1039_v46  ;;  %v238_v54 = vsel %vm235_vm1, %v1037_v45, %v228_v33  ;;  %v294_v46 = vmul.f32 %v290_v34, %v284_v40  ;;  %v351_v45 = vsel %vm347_vm5, %v1065_v14, %v1053_v61  ;;  %v381_v34 = vld [vmem:[#allocation5 + $0xd0] sm:$0xff] }
 0x1ab   :  { %v245_v35 = vmul.f32 %v241_v39, %v238_v54  ;;  %v246_v51 = vmul.f32 %v242_v31, %v237_v41  ;;  %v355_v39 = vld [vmem:[#allocation5 + $0xb0] sm:$0xff]  ;;  %v348_v31 = vsel %vm347_vm5, %v1059_v1, %v1065_v14  ;;  %v360_v32 = vmul.f32 %v356_v9, %v351_v45  ;;  %v405_v9 = vld [vmem:[#allocation5 + $0xe0] sm:$0xff] }
 0x1ac   :  { %v394_v5 = vpop.permute.xlu0 %393  ;;  %v376_v61 = vsel %vm373_vm6, %v1071_v23, %v1090_v44  ;;  %v377_v40 = vsel %vm373_vm6, %v372_v37, %v1071_v23  ;;  %v375_v33 = vsel %vm373_vm6, %v1090_v44, %v1097_v48  ;;  %v357_v41 = vmul.f32 %v353_v17, %v350_v15 }
 0x1ad   :  { %v271_v47 = vadd.f32 %v267_v27, %v245_v35  ;;  %v272_v10 = vadd.f32 %v268_v28, %v246_v51  ;;  %v392_v57 = vpop.permute.xlu1 %391  ;;  %v358_v54 = vmul.f32 %v354_v25, %v349_v26  ;;  %v338_v23 = vadd.f32 %v1101_v18, %v325_v50  ;;  %v407_v50 = vld [vmem:[#allocation5 + $0xf0] sm:$0xff]  ;;  %v431_v26 = vld [vmem:[#allocation5 + $0x100] sm:$0xff] }
 0x1ae   :  { %v359_v52 = vmul.f32 %v355_v39, %v348_v31  ;;  %v386_v44 = vmul.f32 %v382_v30, %v377_v40  ;;  %v384_v59 = vmul.f32 %v380_v29, %v375_v33  ;;  %v402_v18 = vsel %vm399_vm7, %v392_v57, %v394_v5  ;;  %v432_v31 = vld [vmem:[#allocation5 + $0x108] sm:$0xff] }
 0x1af   :  { %v297_v27 = vadd.f32 %v293_v56, %v271_v47  ;;  %v298_v28 = vadd.f32 %v294_v46, %v272_v10  ;;  %v364_v51 = vadd.f32 %v360_v32, %v338_v23  ;;  %v383_v56 = vmul.f32 %v379_v60, %v376_v61 }
 0x1b0   :  { %v398_v63 = vpop.permute.xlu0 %397  ;;  %v385_v46 = vmul.f32 %v381_v34, %v374_v36  ;;  %v409_v39 = vmul.f32 %v405_v9, %v402_v18 }
 0x1b1   :  { %v323_v1 = vadd.f32 %v319_v58, %v297_v27  ;;  %v324_v14 = vadd.f32 %v320_v49, %v298_v28  ;;  %v396_v38 = vpop.permute.xlu1 %395  ;;  %v403_v43 = vsel %vm399_vm7, %v398_v63, %v392_v57  ;;  %v361_v58 = vadd.f32 %v357_v41, %v335_v55  ;;  %v406_v49 = vld [vmem:[#allocation5 + $0xe8] sm:$0xff]  ;;  %v434_v57 = vld [vmem:[#allocation5 + $0x118] sm:$0xff]  ;;  %v433_v55 = vld [vmem:[#allocation5 + $0x110] sm:$0xff] }
 0x1b2   :  { %v412_v47 = vmul.f32 %v408_v42, %v403_v43  ;;  %v390_v17 = vadd.f32 %v386_v44, %v364_v51  ;;  %v443_v43 = vld [vmem:[%s1248_s4] sm:$0xff]  ;;  %v445_v44 = vld [vmem:[%s1248_s4 + $0x10] sm:$0xff] }
 0x1b3   :  { %v337_v53 = vadd.f32 %v1104_v19, %v324_v14  ;;  %v336_v35 = vadd.f32 %v1107_v0, %v323_v1  ;;  %v401_v19 = vsel %vm399_vm7, %v394_v5, %v396_v38  ;;  %v400_v0 = vsel %vm399_vm7, %v396_v38, %v398_v63 }
 0x1b4   :  { %v420_v48 = vpop.permute.xlu0 %419  ;;  %v387_v28 = vadd.f32 %v383_v56, %v361_v58  ;;  %v410_v61 = vmul.f32 %v406_v49, %v401_v19  ;;  %v411_v30 = vmul.f32 %v407_v50, %v400_v0  ;;  %v416_v5 = vadd.f32 %v412_v47, %v390_v17 }
 0x1b5   :  { %v363_v37 = vadd.f32 %v359_v52, %v337_v53  ;;  %v362_v45 = vadd.f32 %v358_v54, %v336_v35  ;;  %v418_v10 = vpop.permute.xlu1 %417  ;;  %v444_v53 = vld [vmem:[%s1248_s4 + $0x8] sm:$0xff]  ;;  %v446_v35 = vld [vmem:[%s1248_s4 + $0x18] sm:$0xff]  ;;  %s857_s4 = smov [#allocation7]  }
 0x1b6   :  { %v428_v27 = vsel %vm425_vm8, %v418_v10, %v420_v48  ;;  %v413_v41 = vadd.f32 %v409_v39, %v387_v28  ;;  %s715_s22 = sshll.u32 %s857_s4, 4  ;;  %s716_s22 = int_to_ptr.vmem [resolvable:$true] %s715_s22 }
 0x1b7   :  { %v389_v15 = vadd.f32 %v385_v46, %v363_v37  ;;  %v388_v25 = vadd.f32 %v384_v59, %v362_v45  ;;  %v435_v60 = vmul.f32 %v431_v26, %v428_v27  ;;  %s815_s23 = scalar_lea.vmem %s716_s22, 2048  ;;  %p820_p3 = scmp.lt.s32.totalorder %s716_s22, %s716_s22 }
 0x1b8   :  { %v424_v32 = vpop.permute.xlu0 %423  ;;  %p816_p2 = scmp.ne.s32.totalorder %s716_s22, %s815_s23  ;;  %p821_p4 = scmp.lt.s32.totalorder %s815_s23, %s815_s23 }
 0x1b9   :  { %v422_v40 = vpop.permute.xlu1 %421  ;;  %v429_v63 = vsel %vm425_vm8, %v424_v32, %v418_v10  ;;  %v414_v14 = vadd.f32 %v410_v61, %v388_v25  ;;  %v415_v34 = vadd.f32 %v411_v30, %v389_v15  ;;  %v439_v52 = vadd.f32 %v435_v60, %v413_v41 }
 0x1ba   :  { %v427_v29 = vsel %vm425_vm8, %v420_v48, %v422_v40  ;;  %v426_v33 = vsel %vm425_vm8, %v422_v40, %v424_v32  ;;  %v438_v1 = vmul.f32 %v434_v57, %v429_v63  ;;  %p822_p5 = por %p821_p4, %p820_p3 }
 0x1bb   :  { %v436_v36 = vmul.f32 %v432_v31, %v427_v29  ;;  %v437_v38 = vmul.f32 %v433_v55, %v426_v33 }
 0x1bc   :  { %v442_v54 = vadd.f32 %v438_v1, %v416_v5  ;;  %p823_p6 = pnand %p822_p5, %p816_p2 }
 0x1bd   :  { %v441_v23 = vadd.f32 %v437_v38, %v415_v34  ;;  %v440_v42 = vadd.f32 %v436_v36, %v414_v14 }
 0x1be   :  { %573 = vmatprep.subr.mxu1 %v442_v54 }
 0x1bf   :  { %484 = vmatprep.subr.mxu0 %v440_v42  ;;  %574 = vmatpush1.msra.mxu1 %v441_v23 }
 0x1c0   :  { %485 = vmatpush1.msra.mxu0 %v439_v52  ;;  %734 = vmatmul.mubr.msk.f32.vlgmr.msra.gmra.mrb[2].mxu1 %vm471_vm9, %v443_v43 }
 0x1c1   :  { %730 = vmatmul.mubr.msk.f32.vlgmr.msra.gmra.mrb[2].mxu0 %vm471_vm9, %v443_v43  ;;  %643 = vmatprep.mubr.f32.mxu1 %v1257_v62 }
 0x1c2   :  { %554 = vmatprep.mubr.f32.mxu0 %v1257_v62 }
 0x1c4   :  { %735 = vmatmul.mubr.msk.f32.gmra.mrb[4].mxu1 %vm471_vm9, %v444_v53 }
 0x1c5   :  { %731 = vmatmul.mubr.msk.f32.gmra.mrb[4].mxu0 %vm471_vm9, %v444_v53  ;;  %649 = vmatprep.mubr.f32.mxu1 %v1257_v62 }
 0x1c6   :  { %560 = vmatprep.mubr.f32.mxu0 %v1257_v62 }
 0x1c8   :  { %736 = vmatmul.mubr.msk.f32.gmra.mrb[6].mxu1 %vm471_vm9, %v445_v44 }
 0x1c9   :  { %732 = vmatmul.mubr.msk.f32.gmra.mrb[6].mxu0 %vm471_vm9, %v445_v44  ;;  %655 = vmatprep.mubr.f32.mxu1 %v1257_v62  ;;  %v459_v10 = vpop.permute.xlu0 %458 }
 0x1ca   :  { %566 = vmatprep.mubr.f32.mxu0 %v1257_v62  ;;  %v454_v51 = vpop.permute.xlu1 %453 }
 0x1cc   :  { %737 = vmatmul.mubr.msk.f32.gmra.mrb[8].mxu1 %vm471_vm9, %v446_v35 }
 0x1cd   :  { %733 = vmatmul.mubr.msk.f32.gmra.mrb[8].mxu0 %vm471_vm9, %v446_v35  ;;  %v469_v36 = vpop.permute.xlu0 %468 }
 0x1ce   :  { %v464_v31 = vpop.permute.xlu1 %463 }
 0x293   :  { %v639_v56 = vpop.f32.mrb[2].mxu1 }
 0x294   :  { %v550_v59 = vpop.f32.mrb[2].mxu0  ;;  %v640_v46 = vadd.f32 %v639_v56, %v454_v51  ;;  %v641_v48 = vpop.f32.mrb[3].mxu1  ;;  %v1258_v56 = vld [vmem:[#allocation12_spill] sm:$0xff] }
 0x295   :  { %v551_v37 = vadd.f32 %v550_v59, %v454_v51  ;;  %v552_v9 = vpop.f32.mrb[3].mxu0  ;;  %v642_v18 = vadd.f32 %v641_v48, %v454_v51 }
 0x296   :  { %v664_v45 = vadd.f32 %v640_v46, %v943_v11  ;;  %v553_v47 = vadd.f32 %v552_v9, %v454_v51  ;;  %v1259_v46 = vld [vmem:[#allocation11_spill] sm:$0xff] }
 0x297   :  { %v662_v58 = vadd.f32 %v551_v37, %v935_v7  ;;  %v665_v49 = vadd.f32 %v642_v18, %v929_v4  ;;  %v645_v19 = vpop.f32.mrb[4].mxu1 }
 0x298   :  { %v680_v50 = vmax.f32 %v664_v45, 0.0  ;;  %v663_v0 = vadd.f32 %v553_v47, %v925_v2  ;;  %v556_v15 = vpop.f32.mrb[4].mxu0  ;;  %v646_v17 = vadd.f32 %v645_v19, %v459_v10  ;;  %v647_v25 = vpop.f32.mrb[5].mxu1 }
 0x299   :  { %v678_v26 = vmax.f32 %v662_v58, 0.0  ;;  %v681_v27 = vmax.f32 %v665_v49, 0.0  ;;  %v557_v57 = vadd.f32 %v556_v15, %v459_v10  ;;  %v558_v28 = vpop.f32.mrb[5].mxu0  ;;  %v648_v39 = vadd.f32 %v647_v25, %v459_v10 }
 0x29a   :  { %696 = vst [vmem:[#allocation7 + $0x10] sm:$0xff] %v680_v50  ;;  %v679_v11 = vmax.f32 %v663_v0, 0.0  ;;  %v668_v55 = vadd.f32 %v646_v17, %v945_v12  ;;  %v559_v7 = vadd.f32 %v558_v28, %v459_v10 }
 0x29b   :  { %694 = vst [vmem:[#allocation7] sm:$0xff] %v678_v26  ;;  %697 = vst [vmem:[#allocation7 + $0x18] sm:$0xff] %v681_v27  ;;  %v666_v4 = vadd.f32 %v557_v57, %v937_v8  ;;  %v669_v2 = vadd.f32 %v648_v39, %v933_v6  ;;  %v651_v32 = vpop.f32.mrb[6].mxu1 }
 0x29c   :  { %695 = vst [vmem:[#allocation7 + $0x8] sm:$0xff] %v679_v11  ;;  %v684_v61 = vmax.f32 %v668_v55, 0.0  ;;  %v667_v30 = vadd.f32 %v559_v7, %v927_v3  ;;  %v562_v5 = vpop.f32.mrb[6].mxu0  ;;  %v652_v40 = vadd.f32 %v651_v32, %v464_v31  ;;  %v653_v63 = vpop.f32.mrb[7].mxu1 }
 0x29d   :  { %v682_v60 = vmax.f32 %v666_v4, 0.0  ;;  %v685_v29 = vmax.f32 %v669_v2, 0.0  ;;  %v563_v33 = vadd.f32 %v562_v5, %v464_v31  ;;  %v564_v1 = vpop.f32.mrb[7].mxu0  ;;  %v654_v12 = vadd.f32 %v653_v63, %v464_v31 }
 0x29e   :  { %700 = vst [vmem:[#allocation7 + $0x30] sm:$0xff] %v684_v61  ;;  %v683_v14 = vmax.f32 %v667_v30, 0.0  ;;  %v672_v34 = vadd.f32 %v652_v40, %v965_v22  ;;  %v565_v8 = vadd.f32 %v564_v1, %v464_v31 }
 0x29f   :  { %698 = vst [vmem:[#allocation7 + $0x20] sm:$0xff] %v682_v60  ;;  %701 = vst [vmem:[#allocation7 + $0x38] sm:$0xff] %v685_v29  ;;  %v670_v6 = vadd.f32 %v563_v33, %v961_v20  ;;  %v673_v3 = vadd.f32 %v654_v12, %v953_v16  ;;  %v657_v38 = vpop.f32.mrb[8].mxu1 }
 0x2a0   :  { %699 = vst [vmem:[#allocation7 + $0x28] sm:$0xff] %v683_v14  ;;  %v688_v41 = vmax.f32 %v672_v34, 0.0  ;;  %v671_v54 = vadd.f32 %v565_v8, %v947_v13  ;;  %v568_v23 = vpop.f32.mrb[8].mxu0  ;;  %v658_v42 = vadd.f32 %v657_v38, %v469_v36  ;;  %v659_v43 = vpop.f32.mrb[9].mxu1 }
 0x2a1   :  { %v686_v52 = vmax.f32 %v670_v6, 0.0  ;;  %v689_v62 = vmax.f32 %v673_v3, 0.0  ;;  %v569_v53 = vadd.f32 %v568_v23, %v469_v36  ;;  %v570_v22 = vpop.f32.mrb[9].mxu0  ;;  %v660_v44 = vadd.f32 %v659_v43, %v469_v36 }
 0x2a2   :  { %704 = vst [vmem:[#allocation7 + $0x50] sm:$0xff] %v688_v41  ;;  %v687_v35 = vmax.f32 %v671_v54, 0.0  ;;  %v676_v51 = vadd.f32 %v658_v42, %v969_v24  ;;  %v571_v20 = vadd.f32 %v570_v22, %v469_v36 }
 0x2a3   :  { %702 = vst [vmem:[#allocation7 + $0x40] sm:$0xff] %v686_v52  ;;  %705 = vst [vmem:[#allocation7 + $0x58] sm:$0xff] %v689_v62  ;;  %v674_v16 = vadd.f32 %v569_v53, %v963_v21  ;;  %v677_v59 = vadd.f32 %v660_v44, %v1258_v56 }
 0x2a4   :  { %703 = vst [vmem:[#allocation7 + $0x48] sm:$0xff] %v687_v35  ;;  %v692_v13 = vmax.f32 %v676_v51, 0.0  ;;  %v675_v48 = vadd.f32 %v571_v20, %v1259_v46 }
 0x2a5   :  { %v690_v37 = vmax.f32 %v674_v16, 0.0  ;;  %v693_v9 = vmax.f32 %v677_v59, 0.0 }
 0x2a6   :  { %708 = vst [vmem:[#allocation7 + $0x70] sm:$0xff] %v692_v13  ;;  %v691_v18 = vmax.f32 %v675_v48, 0.0 }
 0x2a7   :  { %706 = vst [vmem:[#allocation7 + $0x60] sm:$0xff] %v690_v37  ;;  %709 = vst [vmem:[#allocation7 + $0x78] sm:$0xff] %v693_v9 }
 0x2a8   :  { %707 = vst [vmem:[#allocation7 + $0x68] sm:$0xff] %v691_v18 }
 0x2a9   :  { %826 = shalt.err (!%p823_p6)
}
 0x2aa   :  { %s827_s2 = scalar_lea.hbm %s1250_s6, 2048 }
 0x2ab   :  { %p828_p7 = scmp.ne.s32.totalorder %s1250_s6, %s827_s2  ;;  %p831_p8 = scmp.lt.u32.totalorder %s827_s2, %s1250_s6 }
 0x2ad   :  { %p833_p9 = pnand %p831_p8, %p828_p7 }
 0x2af   :  { %836 = shalt.err (!%p833_p9)
}
 0x2b0   :  { %721 = dma.vmem_to_hbm [thread:$0]  %s716_s22, 2048, %s1250_s6, [#allocation4], %s844_s7, %s844_s7, %s845_s8  }
 0x2b1   :  { %841 = dma.done.wait [#allocation4], 2048  }
 0x2b2   :  { %842 = vsyncadd [#allocation4], 4294965248 }
 0x2b3   :  { %725 = vsyncpa [#allocation3], 1 }
 0x2b4   :  { %726 = vsyncpa [#allocation6], 1 }
 0x2b5   :  { %727 = vsyncpa [#allocation4], 1 }

</bundles_post_ra>
